<compile_context>
chip_gen: v7x
topology: tpu7x:2x2x1
jax: 0.10.0
libtpu: 0.0.40
codegen_flags: <defaults>
</compile_context>

<pallas_src>
import functools

import numpy as np
import jax
import jax.numpy as jnp
from jax.experimental import pallas as pl
from jax.experimental.pallas import tpu as pltpu


# ----------------------------- Pallas kernel ------------------------------ #
def scb_kernel(s_ref, l1_ref, w1_ref, w3b_ref, wbig_ref, bias_ref, o_ref,
               *, beta, tile_e):
    # s_ref    : [1, Beta, 4]           f32   (f32 edge-sum, per batch)
    # l1_ref   : [1, Beta, tile_E, 4]   f32   (padded cycle features, edge fastest)
    # w1_ref   : [4, 128]               bf16  (W1 lane-padded; true width 64)
    # w3b_ref  : [4, 128]               bf16  (rows 64:68 of W3)
    # wbig_ref : [3, 128, 128]          bf16  (W2@W3a pad, W4@W5 pad, W6 pad)
    # bias_ref : [8, 128]               f32   (b1p, b2@W3a+b3, Beta*b4@W5+b5, b6p, 0..)
    # o_ref    : [1, tile_E, 128]       bf16  (true output in lanes 0:n_hid)
    bias = bias_ref[...]
    b1, b3f, b45, b6 = bias[0:1], bias[1:2], bias[2:3], bias[3:4]

    # ---- tiny per-batch z path (Beta rows); recomputed per grid step ----
    s = s_ref[0].astype(jnp.bfloat16)                                   # [Beta, 4]
    h0 = jnp.maximum(
        jnp.dot(s, w1_ref[...], preferred_element_type=jnp.float32) + b1, 0.0)
    z = jnp.dot(h0.astype(jnp.bfloat16), wbig_ref[0],                  # W2@W3a folded
                preferred_element_type=jnp.float32)                    # [Beta, 128]

    # ---- per-edge path: one MXU matmul over the whole (Beta, tile_E) block ----
    l1 = l1_ref[0].reshape(beta * tile_e, 4).astype(jnp.bfloat16)
    t = jnp.dot(l1, w3b_ref[...],
                preferred_element_type=jnp.float32)                    # [Beta*tile_E, 128]

    # ---- beta accumulation: no [tile_E, Beta, 128] relu slab, no XLU reduce ----
    acc = jnp.zeros((tile_e, 128), jnp.float32)
    for b in range(beta):                     # static unroll; Beta is compile-time const
        acc = acc + jnp.maximum(t[b * tile_e:(b + 1) * tile_e] + z[b:b + 1] + b3f, 0.0)

    # ---- W4@W5 folded; Beta*b4@W5 + b5 folded into b45 ----
    a = jnp.maximum(
        jnp.dot(acc.astype(jnp.bfloat16), wbig_ref[1],
                preferred_element_type=jnp.float32) + b45, 0.0)
    out = jnp.dot(a.astype(jnp.bfloat16), wbig_ref[2],
                  preferred_element_type=jnp.float32) + b6
    o_ref[0] = out.astype(o_ref.dtype)        # lane-dense bf16 store [tile_E, 128]


# --------------------------- parameter packing ----------------------------- #
def pack_params(params, beta):
    """Fold the two Linear-Linear pairs in f32, pad to 128 lanes, cast to bf16."""
    H = params['w6'].shape[1]
    assert H <= 128  # TODO(synk): tile the output lane dim if n_hid > 128

    # f32 algebraic folds (no nonlinearity between the fused Linears)
    w23 = params['w2'] @ params['w3a']                              # [64, 128]
    b3f = params['b2'] @ params['w3a'] + params['b3']               # [1, 128]
    w45 = params['w4'] @ params['w5']                               # [128, H]
    b45 = float(beta) * (params['b4'] @ params['w5']) + params['b5']  # [1, H]

    def padw(w):
        out = jnp.zeros((128, 128), jnp.float32)
        return out.at[:w.shape[0], :w.shape[1]].set(w)

    def padb(b):
        out = jnp.zeros((128,), jnp.float32)
        return out.at[:b.shape[-1]].set(b.reshape(-1))

    w1p = jnp.zeros((4, 128), jnp.float32).at[:, :64].set(params['w1'])
    w3b = params['w3b']                                             # already [4, 128]
    wbig = jnp.stack([padw(w23), padw(w45), padw(params['w6'])], axis=0)
    zeros = jnp.zeros((128,), jnp.float32)
    bias = jnp.stack([padb(params['b1']), padb(b3f), padb(b45), padb(params['b6']),
                      zeros, zeros, zeros, zeros], axis=0)
    return (w1p.astype(jnp.bfloat16), w3b.astype(jnp.bfloat16),
            wbig.astype(jnp.bfloat16), bias.astype(jnp.float32))


# ------------------------------- wrapper ----------------------------------- #
def scb_forward(L1, params, *, tile_e=16):
    """Pallas wrapper: L1 [B, E, Beta, 4] -> per-edge embeddings [B, E, H]."""
    B, E, Beta, F = L1.shape
    H = params['w6'].shape[1]

    w1p, w3b, wbig, bias = pack_params(params, Beta)

    # f32 edge-sum done wrapper-side (tiny, matches reference precision)
    s = L1.sum(axis=1)                                  # [B, Beta, 4] f32

    # beta-major layout so per-beta slices are contiguous sublane blocks
    l1_t = jnp.transpose(L1, (0, 2, 1, 3))              # [B, Beta, E, 4]
    e_pad = ((E + tile_e - 1) // tile_e) * tile_e
    if e_pad != E:
        l1_t = jnp.pad(l1_t, ((0, 0), (0, 0), (0, e_pad - E), (0, 0)))

    kernel = functools.partial(scb_kernel, beta=Beta, tile_e=tile_e)

    out = pl.pallas_call(
        kernel,
        out_shape=jax.ShapeDtypeStruct((B, e_pad, 128), jnp.bfloat16),
        grid=(B, e_pad // tile_e),
        in_specs=[
            pl.BlockSpec((1, Beta, F), lambda b, e: (b, 0, 0)),          # s (per batch)
            pl.BlockSpec((1, Beta, tile_e, F), lambda b, e: (b, 0, e, 0)),  # L1 tile
            pl.BlockSpec((4, 128), lambda b, e: (0, 0)),                 # W1 (constant)
            pl.BlockSpec((4, 128), lambda b, e: (0, 0)),                 # W3b (constant)
            pl.BlockSpec((3, 128, 128), lambda b, e: (0, 0, 0)),         # folded weights
            pl.BlockSpec((8, 128), lambda b, e: (0, 0)),                 # biases
        ],
        out_specs=pl.BlockSpec((1, tile_e, 128), lambda b, e: (b, e, 0)),
        compiler_params=pltpu.CompilerParams(
            dimension_semantics=("parallel", "parallel"),
            vmem_limit_bytes=32 * 1024 * 1024),
    )(s, l1_t, w1p, w3b, wbig, bias)

    return out[:, :E, :H].astype(jnp.float32)           # drop edge/lane padding


# ----------------------- parameters (deterministic) ------------------------ #
def init_params(key, n_hid):
    dims = [('w1', (4, 64)), ('b1', (1, 64)), ('w2', (64, 64)), ('b2', (1, 64)),
            ('w3', (68, 128)), ('b3', (1, 128)), ('w4', (128, 128)), ('b4', (1, 128)),
            ('w5', (128, n_hid)), ('b5', (1, n_hid)),
            ('w6', (n_hid, n_hid)), ('b6', (1, n_hid))]
    keys = jax.random.split(key, len(dims))
    p = {}
    for (name, shape), k in zip(dims, keys):
        fan_in = shape[0] if name.startswith('w') else shape[1]
        p[name] = (jax.random.normal(k, shape, jnp.float32) / np.sqrt(fan_in)).astype(jnp.float32)
    # split W3: rows 0:64 act on the expanded SCB_emb (first in torch.cat),
    # rows 64:68 act on the raw L1 features (second in torch.cat)
    p['w3a'] = p['w3'][:64]
    p['w3b'] = p['w3'][64:]
    del p['w3']
    return p


# -------------------- pure-JAX reference (torch semantics) ----------------- #
def scb_reference(L1, params):
    w3 = jnp.concatenate([params['w3a'], params['w3b']], axis=0)          # [68, 128]
    s = L1.sum(axis=1)                                                    # [B, Beta, 4]
    h1 = jax.nn.relu(s @ params['w1'] + params['b1']) @ params['w2'] + params['b2']
    h1 = jnp.broadcast_to(h1[:, None], (L1.shape[0], L1.shape[1]) + h1.shape[1:])
    x = jnp.concatenate([h1, L1], axis=-1)                                # [B, E, Beta, 68]
    t = jax.nn.relu(x @ w3 + params['b3']) @ params['w4'] + params['b4']  # [B, E, Beta, 128]
    emb = t.sum(axis=2)                                                   # [B, E, 128]
    out = jax.nn.relu(emb @ params['w5'] + params['b5']) @ params['w6'] + params['b6']
    return out                                                            # [B, E, H]


# --------------------------- data construction ----------------------------- #
def build_graph(key, n_nodes, n_edges, n_beta, node_feat=2):
    kx, ke, ks = jax.random.split(key, 3)
    x = jax.random.normal(kx, (n_nodes, node_feat), jnp.float32)
    edge_index = jax.random.randint(ke, (2, n_edges), 0, n_nodes)
    scb = jax.random.randint(ks, (n_beta, n_edges), -1, 2).astype(jnp.float32)
    return x, edge_index, scb


def graph_to_scb_feat(x, edge_index, scb):
    E = edge_index.shape[1]
    # e_feat = x[edge_index].transpose(0,1).reshape(E, -1)  -> [E, 2*node_feat]=[E,4]
    e_feat = jnp.transpose(x[edge_index], (1, 0, 2)).reshape(E, -1)
    SCB = jnp.abs(scb)                                                    # [beta, E]
    return e_feat[None, :, :] * SCB[:, :, None]                           # [beta, E, 4]


def pad_scb(scb_feat, max_edge, max_beta):
    beta, E, F = scb_feat.shape
    padded = jnp.zeros((max_beta, max_edge, F), scb_feat.dtype).at[:beta, :E].set(scb_feat)
    mask = jnp.zeros((max_edge,), bool).at[:E].set(True)
    return padded, mask


# --------------------------------- main ------------------------------------ #
if __name__ == "__main__":
    key = jax.random.PRNGKey(0)
    k_p, k_g1, k_g2 = jax.random.split(key, 3)

    n_hid = 32
    params = init_params(k_p, n_hid)

    # two graphs with different edge / cycle counts (node_feat = 2 -> 4 edge feats)
    g1 = build_graph(k_g1, n_nodes=6, n_edges=10, n_beta=5)
    g2 = build_graph(k_g2, n_nodes=8, n_edges=20, n_beta=8)

    feats = [graph_to_scb_feat(*g) for g in (g1, g2)]
    max_edge = max(f.shape[1] for f in feats)
    max_beta = max(f.shape[0] for f in feats)

    padded, masks = zip(*(pad_scb(f, max_edge, max_beta) for f in feats))
    L1 = jnp.stack(padded, axis=0)              # [B, max_beta, max_edge, 4]
    L1 = jnp.transpose(L1, (0, 2, 1, 3))        # [B, max_edge, max_beta, 4]
    pad_masks = jnp.concatenate(masks)          # [B * max_edge]

    out = scb_forward(L1, params, tile_e=16)    # [B, max_edge, n_hid]; grid (2, 2)
    out = jax.block_until_ready(out)

    ref = scb_reference(L1, params)
    out_np = np.asarray(out, dtype=np.float32)
    ref_np = np.asarray(ref, dtype=np.float32)
    # bf16 matmul inputs / bf16 output store (f32 accumulation) -> bf16 tolerance
    rel_fro = np.linalg.norm(out_np - ref_np) / np.linalg.norm(ref_np)
    assert rel_fro < 5e-2, f"relative Frobenius error too large: {rel_fro}"
    np.testing.assert_allclose(out_np, ref_np, rtol=5e-2,
                               atol=5e-2 * float(np.max(np.abs(ref_np))))

    # L1 = L1[Pad_Masks]: drop padded edges (dynamic shape -> done outside kernel)
    L1_edges = out_np.reshape(-1, n_hid)[np.asarray(pad_masks)]
    assert L1_edges.shape == (10 + 20, n_hid)

    print("KERNEL_OK")
</pallas_src>

<mosaic_0001>
module attributes {stable_mosaic.version = 11 : i64} {
  func.func @scb_kernel(%arg0: i32, %arg1: i32, %arg2: memref<1x8x4xf32, #tpu.memory_space<vmem>>, %arg3: memref<1x8x16x4xf32, #tpu.memory_space<vmem>>, %arg4: memref<4x128xbf16, #tpu.memory_space<vmem>>, %arg5: memref<4x128xbf16, #tpu.memory_space<vmem>>, %arg6: memref<3x128x128xbf16, #tpu.memory_space<vmem>>, %arg7: memref<8x128xf32, #tpu.memory_space<vmem>>, %arg8: memref<1x16x128xbf16, #tpu.memory_space<vmem>>) attributes {dimension_semantics = [#tpu.dimension_semantics<parallel>, #tpu.dimension_semantics<parallel>], iteration_bounds = array<i64: 2, 2>, scalar_prefetch = 0 : i64, scratch_operands = 0 : i64, tpu.core_type = #tpu.core_type<tc>, window_params = [{transform_indices = @transform_0, window_bounds = array<i64: 1, 8, 4>}, {transform_indices = @transform_1, window_bounds = array<i64: 1, 8, 16, 4>}, {pipeline_mode = #tpu.pipeline_mode<synchronous>, transform_indices = @transform_2, window_bounds = array<i64: 4, 128>}, {pipeline_mode = #tpu.pipeline_mode<synchronous>, transform_indices = @transform_3, window_bounds = array<i64: 4, 128>}, {pipeline_mode = #tpu.pipeline_mode<synchronous>, transform_indices = @transform_4, window_bounds = array<i64: 3, 128, 128>}, {pipeline_mode = #tpu.pipeline_mode<synchronous>, transform_indices = @transform_5, window_bounds = array<i64: 8, 128>}, {transform_indices = @transform_6, window_bounds = array<i64: 1, 16, 128>}]} {
    %c0 = arith.constant 0 : index
    %c0_0 = arith.constant 0 : index
    %0 = vector.load %arg7[%c0, %c0_0] : memref<8x128xf32, #tpu.memory_space<vmem>>, vector<8x128xf32>
    %1 = vector.extract_strided_slice %0 {offsets = [0, 0], sizes = [1, 128], strides = [1, 1]} : vector<8x128xf32> to vector<1x128xf32>
    %2 = vector.extract_strided_slice %0 {offsets = [1, 0], sizes = [1, 128], strides = [1, 1]} : vector<8x128xf32> to vector<1x128xf32>
    %3 = vector.extract_strided_slice %0 {offsets = [2, 0], sizes = [1, 128], strides = [1, 1]} : vector<8x128xf32> to vector<1x128xf32>
    %4 = vector.extract_strided_slice %0 {offsets = [3, 0], sizes = [1, 128], strides = [1, 1]} : vector<8x128xf32> to vector<1x128xf32>
    %c0_1 = arith.constant 0 : index
    %c0_2 = arith.constant 0 : index
    %c0_3 = arith.constant 0 : index
    %5 = vector.load %arg2[%c0_1, %c0_2, %c0_3] : memref<1x8x4xf32, #tpu.memory_space<vmem>>, vector<1x8x4xf32>
    %6 = vector.shape_cast %5 : vector<1x8x4xf32> to vector<8x4xf32>
    %7 = arith.truncf %6 : vector<8x4xf32> to vector<8x4xbf16>
    %c0_4 = arith.constant 0 : index
    %c0_5 = arith.constant 0 : index
    %8 = vector.load %arg4[%c0_4, %c0_5] : memref<4x128xbf16, #tpu.memory_space<vmem>>, vector<4x128xbf16>
    %cst = arith.constant dense<0.000000e+00> : vector<8x128xf32>
    %9 = tpu.matmul %7, %8, %cst {dimension_numbers = #tpu.dot_dimension_numbers<[1], [0], [0], [1], [0, 0, 1, 1], [], []>} : vector<8x4xbf16>, vector<4x128xbf16>, vector<8x128xf32> -> vector<8x128xf32>
    %10 = vector.broadcast %1 : vector<1x128xf32> to vector<8x128xf32>
    %11 = arith.addf %9, %10 : vector<8x128xf32>
    %cst_6 = arith.constant 0.000000e+00 : f32
    %12 = vector.broadcast %cst_6 : f32 to vector<8x128xf32>
    %13 = arith.maximumf %11, %12 : vector<8x128xf32>
    %14 = arith.truncf %13 : vector<8x128xf32> to vector<8x128xbf16>
    %c0_7 = arith.constant 0 : index
    %c0_8 = arith.constant 0 : index
    %c0_9 = arith.constant 0 : index
    %15 = vector.load %arg6[%c0_7, %c0_8, %c0_9] : memref<3x128x128xbf16, #tpu.memory_space<vmem>>, vector<1x128x128xbf16>
    %16 = vector.shape_cast %15 : vector<1x128x128xbf16> to vector<128x128xbf16>
    %cst_10 = arith.constant dense<0.000000e+00> : vector<8x128xf32>
    %17 = tpu.matmul %14, %16, %cst_10 {dimension_numbers = #tpu.dot_dimension_numbers<[1], [0], [0], [1], [0, 0, 1, 1], [], []>} : vector<8x128xbf16>, vector<128x128xbf16>, vector<8x128xf32> -> vector<8x128xf32>
    %c0_11 = arith.constant 0 : index
    %c0_12 = arith.constant 0 : index
    %c0_13 = arith.constant 0 : index
    %c0_14 = arith.constant 0 : index
    %18 = vector.load %arg3[%c0_11, %c0_12, %c0_13, %c0_14] : memref<1x8x16x4xf32, #tpu.memory_space<vmem>>, vector<1x8x16x4xf32>
    %19 = vector.shape_cast %18 : vector<1x8x16x4xf32> to vector<8x16x4xf32>
    %20 = vector.shape_cast %19 : vector<8x16x4xf32> to vector<128x4xf32>
    %21 = arith.truncf %20 : vector<128x4xf32> to vector<128x4xbf16>
    %c0_15 = arith.constant 0 : index
    %c0_16 = arith.constant 0 : index
    %22 = vector.load %arg5[%c0_15, %c0_16] : memref<4x128xbf16, #tpu.memory_space<vmem>>, vector<4x128xbf16>
    %cst_17 = arith.constant dense<0.000000e+00> : vector<128x128xf32>
    %23 = tpu.matmul %21, %22, %cst_17 {dimension_numbers = #tpu.dot_dimension_numbers<[1], [0], [0], [1], [0, 0, 1, 1], [], []>} : vector<128x4xbf16>, vector<4x128xbf16>, vector<128x128xf32> -> vector<128x128xf32>
    %cst_18 = arith.constant 0.000000e+00 : f32
    %24 = vector.broadcast %cst_18 : f32 to vector<16x128xf32>
    %25 = vector.extract_strided_slice %23 {offsets = [0, 0], sizes = [16, 128], strides = [1, 1]} : vector<128x128xf32> to vector<16x128xf32>
    %26 = vector.extract_strided_slice %17 {offsets = [0, 0], sizes = [1, 128], strides = [1, 1]} : vector<8x128xf32> to vector<1x128xf32>
    %27 = vector.broadcast %26 : vector<1x128xf32> to vector<16x128xf32>
    %28 = arith.addf %25, %27 : vector<16x128xf32>
    %29 = vector.broadcast %2 : vector<1x128xf32> to vector<16x128xf32>
    %30 = arith.addf %28, %29 : vector<16x128xf32>
    %cst_19 = arith.constant 0.000000e+00 : f32
    %31 = vector.broadcast %cst_19 : f32 to vector<16x128xf32>
    %32 = arith.maximumf %30, %31 : vector<16x128xf32>
    %33 = arith.addf %24, %32 : vector<16x128xf32>
    %34 = vector.extract_strided_slice %23 {offsets = [16, 0], sizes = [16, 128], strides = [1, 1]} : vector<128x128xf32> to vector<16x128xf32>
    %35 = vector.extract_strided_slice %17 {offsets = [1, 0], sizes = [1, 128], strides = [1, 1]} : vector<8x128xf32> to vector<1x128xf32>
    %36 = vector.broadcast %35 : vector<1x128xf32> to vector<16x128xf32>
    %37 = arith.addf %34, %36 : vector<16x128xf32>
    %38 = vector.broadcast %2 : vector<1x128xf32> to vector<16x128xf32>
    %39 = arith.addf %37, %38 : vector<16x128xf32>
    %cst_20 = arith.constant 0.000000e+00 : f32
    %40 = vector.broadcast %cst_20 : f32 to vector<16x128xf32>
    %41 = arith.maximumf %39, %40 : vector<16x128xf32>
    %42 = arith.addf %33, %41 : vector<16x128xf32>
    %43 = vector.extract_strided_slice %23 {offsets = [32, 0], sizes = [16, 128], strides = [1, 1]} : vector<128x128xf32> to vector<16x128xf32>
    %44 = vector.extract_strided_slice %17 {offsets = [2, 0], sizes = [1, 128], strides = [1, 1]} : vector<8x128xf32> to vector<1x128xf32>
    %45 = vector.broadcast %44 : vector<1x128xf32> to vector<16x128xf32>
    %46 = arith.addf %43, %45 : vector<16x128xf32>
    %47 = vector.broadcast %2 : vector<1x128xf32> to vector<16x128xf32>
    %48 = arith.addf %46, %47 : vector<16x128xf32>
    %cst_21 = arith.constant 0.000000e+00 : f32
    %49 = vector.broadcast %cst_21 : f32 to vector<16x128xf32>
    %50 = arith.maximumf %48, %49 : vector<16x128xf32>
    %51 = arith.addf %42, %50 : vector<16x128xf32>
    %52 = vector.extract_strided_slice %23 {offsets = [48, 0], sizes = [16, 128], strides = [1, 1]} : vector<128x128xf32> to vector<16x128xf32>
    %53 = vector.extract_strided_slice %17 {offsets = [3, 0], sizes = [1, 128], strides = [1, 1]} : vector<8x128xf32> to vector<1x128xf32>
    %54 = vector.broadcast %53 : vector<1x128xf32> to vector<16x128xf32>
    %55 = arith.addf %52, %54 : vector<16x128xf32>
    %56 = vector.broadcast %2 : vector<1x128xf32> to vector<16x128xf32>
    %57 = arith.addf %55, %56 : vector<16x128xf32>
    %cst_22 = arith.constant 0.000000e+00 : f32
    %58 = vector.broadcast %cst_22 : f32 to vector<16x128xf32>
    %59 = arith.maximumf %57, %58 : vector<16x128xf32>
    %60 = arith.addf %51, %59 : vector<16x128xf32>
    %61 = vector.extract_strided_slice %23 {offsets = [64, 0], sizes = [16, 128], strides = [1, 1]} : vector<128x128xf32> to vector<16x128xf32>
    %62 = vector.extract_strided_slice %17 {offsets = [4, 0], sizes = [1, 128], strides = [1, 1]} : vector<8x128xf32> to vector<1x128xf32>
    %63 = vector.broadcast %62 : vector<1x128xf32> to vector<16x128xf32>
    %64 = arith.addf %61, %63 : vector<16x128xf32>
    %65 = vector.broadcast %2 : vector<1x128xf32> to vector<16x128xf32>
    %66 = arith.addf %64, %65 : vector<16x128xf32>
    %cst_23 = arith.constant 0.000000e+00 : f32
    %67 = vector.broadcast %cst_23 : f32 to vector<16x128xf32>
    %68 = arith.maximumf %66, %67 : vector<16x128xf32>
    %69 = arith.addf %60, %68 : vector<16x128xf32>
    %70 = vector.extract_strided_slice %23 {offsets = [80, 0], sizes = [16, 128], strides = [1, 1]} : vector<128x128xf32> to vector<16x128xf32>
    %71 = vector.extract_strided_slice %17 {offsets = [5, 0], sizes = [1, 128], strides = [1, 1]} : vector<8x128xf32> to vector<1x128xf32>
    %72 = vector.broadcast %71 : vector<1x128xf32> to vector<16x128xf32>
    %73 = arith.addf %70, %72 : vector<16x128xf32>
    %74 = vector.broadcast %2 : vector<1x128xf32> to vector<16x128xf32>
    %75 = arith.addf %73, %74 : vector<16x128xf32>
    %cst_24 = arith.constant 0.000000e+00 : f32
    %76 = vector.broadcast %cst_24 : f32 to vector<16x128xf32>
    %77 = arith.maximumf %75, %76 : vector<16x128xf32>
    %78 = arith.addf %69, %77 : vector<16x128xf32>
    %79 = vector.extract_strided_slice %23 {offsets = [96, 0], sizes = [16, 128], strides = [1, 1]} : vector<128x128xf32> to vector<16x128xf32>
    %80 = vector.extract_strided_slice %17 {offsets = [6, 0], sizes = [1, 128], strides = [1, 1]} : vector<8x128xf32> to vector<1x128xf32>
    %81 = vector.broadcast %80 : vector<1x128xf32> to vector<16x128xf32>
    %82 = arith.addf %79, %81 : vector<16x128xf32>
    %83 = vector.broadcast %2 : vector<1x128xf32> to vector<16x128xf32>
    %84 = arith.addf %82, %83 : vector<16x128xf32>
    %cst_25 = arith.constant 0.000000e+00 : f32
    %85 = vector.broadcast %cst_25 : f32 to vector<16x128xf32>
    %86 = arith.maximumf %84, %85 : vector<16x128xf32>
    %87 = arith.addf %78, %86 : vector<16x128xf32>
    %88 = vector.extract_strided_slice %23 {offsets = [112, 0], sizes = [16, 128], strides = [1, 1]} : vector<128x128xf32> to vector<16x128xf32>
    %89 = vector.extract_strided_slice %17 {offsets = [7, 0], sizes = [1, 128], strides = [1, 1]} : vector<8x128xf32> to vector<1x128xf32>
    %90 = vector.broadcast %89 : vector<1x128xf32> to vector<16x128xf32>
    %91 = arith.addf %88, %90 : vector<16x128xf32>
    %92 = vector.broadcast %2 : vector<1x128xf32> to vector<16x128xf32>
    %93 = arith.addf %91, %92 : vector<16x128xf32>
    %cst_26 = arith.constant 0.000000e+00 : f32
    %94 = vector.broadcast %cst_26 : f32 to vector<16x128xf32>
    %95 = arith.maximumf %93, %94 : vector<16x128xf32>
    %96 = arith.addf %87, %95 : vector<16x128xf32>
    %97 = arith.truncf %96 : vector<16x128xf32> to vector<16x128xbf16>
    %c1 = arith.constant 1 : index
    %c0_27 = arith.constant 0 : index
    %c0_28 = arith.constant 0 : index
    %98 = vector.load %arg6[%c1, %c0_27, %c0_28] : memref<3x128x128xbf16, #tpu.memory_space<vmem>>, vector<1x128x128xbf16>
    %99 = vector.shape_cast %98 : vector<1x128x128xbf16> to vector<128x128xbf16>
    %cst_29 = arith.constant dense<0.000000e+00> : vector<16x128xf32>
    %100 = tpu.matmul %97, %99, %cst_29 {dimension_numbers = #tpu.dot_dimension_numbers<[1], [0], [0], [1], [0, 0, 1, 1], [], []>} : vector<16x128xbf16>, vector<128x128xbf16>, vector<16x128xf32> -> vector<16x128xf32>
    %101 = vector.broadcast %3 : vector<1x128xf32> to vector<16x128xf32>
    %102 = arith.addf %100, %101 : vector<16x128xf32>
    %cst_30 = arith.constant 0.000000e+00 : f32
    %103 = vector.broadcast %cst_30 : f32 to vector<16x128xf32>
    %104 = arith.maximumf %102, %103 : vector<16x128xf32>
    %105 = arith.truncf %104 : vector<16x128xf32> to vector<16x128xbf16>
    %c2 = arith.constant 2 : index
    %c0_31 = arith.constant 0 : index
    %c0_32 = arith.constant 0 : index
    %106 = vector.load %arg6[%c2, %c0_31, %c0_32] : memref<3x128x128xbf16, #tpu.memory_space<vmem>>, vector<1x128x128xbf16>
    %107 = vector.shape_cast %106 : vector<1x128x128xbf16> to vector<128x128xbf16>
    %cst_33 = arith.constant dense<0.000000e+00> : vector<16x128xf32>
    %108 = tpu.matmul %105, %107, %cst_33 {dimension_numbers = #tpu.dot_dimension_numbers<[1], [0], [0], [1], [0, 0, 1, 1], [], []>} : vector<16x128xbf16>, vector<128x128xbf16>, vector<16x128xf32> -> vector<16x128xf32>
    %109 = vector.broadcast %4 : vector<1x128xf32> to vector<16x128xf32>
    %110 = arith.addf %108, %109 : vector<16x128xf32>
    %111 = arith.truncf %110 : vector<16x128xf32> to vector<16x128xbf16>
    %c0_34 = arith.constant 0 : index
    %c0_35 = arith.constant 0 : index
    %c0_36 = arith.constant 0 : index
    %112 = vector.load %arg8[%c0_34, %c0_35, %c0_36] : memref<1x16x128xbf16, #tpu.memory_space<vmem>>, vector<1x16x128xbf16>
    %113 = vector.shape_cast %112 : vector<1x16x128xbf16> to vector<16x128xbf16>
    %114 = vector.shape_cast %111 : vector<16x128xbf16> to vector<1x16x128xbf16>
    tpu.vector_store %arg8[%c0_34, %c0_35, %c0_36], %114 {strides = array<i32>} : memref<1x16x128xbf16, #tpu.memory_space<vmem>>, vector<1x16x128xbf16>,
    return
  }
  func.func @transform_0(%arg0: i32, %arg1: i32) -> (i32, i32, i32) {
    %c0_i32 = arith.constant 0 : i32
    %c0_i32_0 = arith.constant 0 : i32
    %c0_i32_1 = arith.constant 0 : i32
    return %arg0, %c0_i32, %c0_i32_0 : i32, i32, i32
  }
  func.func @transform_1(%arg0: i32, %arg1: i32) -> (i32, i32, i32, i32) {
    %c0_i32 = arith.constant 0 : i32
    %c0_i32_0 = arith.constant 0 : i32
    %c0_i32_1 = arith.constant 0 : i32
    return %arg0, %c0_i32, %arg1, %c0_i32_0 : i32, i32, i32, i32
  }
  func.func @transform_2(%arg0: i32, %arg1: i32) -> (i32, i32) {
    %c0_i32 = arith.constant 0 : i32
    %c0_i32_0 = arith.constant 0 : i32
    %c0_i32_1 = arith.constant 0 : i32
    return %c0_i32, %c0_i32_0 : i32, i32
  }
  func.func @transform_3(%arg0: i32, %arg1: i32) -> (i32, i32) {
    %c0_i32 = arith.constant 0 : i32
    %c0_i32_0 = arith.constant 0 : i32
    %c0_i32_1 = arith.constant 0 : i32
    return %c0_i32, %c0_i32_0 : i32, i32
  }
  func.func @transform_4(%arg0: i32, %arg1: i32) -> (i32, i32, i32) {
    %c0_i32 = arith.constant 0 : i32
    %c0_i32_0 = arith.constant 0 : i32
    %c0_i32_1 = arith.constant 0 : i32
    %c0_i32_2 = arith.constant 0 : i32
    return %c0_i32, %c0_i32_0, %c0_i32_1 : i32, i32, i32
  }
  func.func @transform_5(%arg0: i32, %arg1: i32) -> (i32, i32) {
    %c0_i32 = arith.constant 0 : i32
    %c0_i32_0 = arith.constant 0 : i32
    %c0_i32_1 = arith.constant 0 : i32
    return %c0_i32, %c0_i32_0 : i32, i32
  }
  func.func @transform_6(%arg0: i32, %arg1: i32) -> (i32, i32, i32) {
    %c0_i32 = arith.constant 0 : i32
    %c0_i32_0 = arith.constant 0 : i32
    return %arg0, %arg1, %c0_i32 : i32, i32, i32
  }
}

</mosaic_0001>

<bundles_post_ra>
// kernel: tpu_custom_call.1
= control target key start
LH: loop header
LB: loop body
LE: loop exit
PB: predicated region body
PF: predicated region fallthrough
CT: control target
= control target key end

     0   :  { %11 = vsyncpa [#allocation4], 0  ;;  %s2003_s0 = inlined_call_operand.vmem [shape: f32[2,8,4], index: 0, kind: input, shape index: {}]   ;;  %s2004_s1 = inlined_call_operand.vmem [shape: f32[2,8,32,4], index: 1, kind: input, shape index: {}]   ;;  %s2005_s2 = inlined_call_operand.vmem [shape: bf16[4,128], index: 2, kind: input, shape index: {}]   ;;  %s2006_s3 = inlined_call_operand.vmem [shape: bf16[4,128], index: 3, kind: input, shape index: {}]   ;;  %s2007_s4 = inlined_call_operand.vmem [shape: bf16[3,128,128], index: 4, kind: input, shape index: {}]   ;;  %s2008_s5 = inlined_call_operand.vmem [shape: f32[8,128], index: 5, kind: input, shape index: {}]   ;;  %s2009_s6 = inlined_call_operand.hbm [shape: bf16[2,32,128], index: 6, kind: output, shape index: {}]  }
   0x1   :  { %13 = vsyncpa [#allocation4 + $0x1], 0  ;;  %s1591_s21 = smov 0   ;;  %s1593_s22 = smov 0  }
   0x2   :  { %s1595_s23 = smov 0   ;;  %s1597_s24 = smov 0  }
   0x3   :  { %s1599_s25 = smov 0   ;;  %s1601_s26 = smov 0  }
   0x4   :  { %s1603_s27 = smov 0   ;;  %s1605_s28 = smov 0  }
   0x5 LB: > { %s1141_s29 = sadd.s32 4294967295, %s1549_s28   ;;  %s1142_s30 = sadd.s32 4294967294, %s1549_s28   ;;  %s1549_s28 = sphi %s1605_s28, %s19_s28   ;;  %s1545_s27 = sphi %s1603_s27, %s2019_s27   ;;  %s1541_s26 = sphi %s1601_s26, %s2018_s26   ;;  %s1537_s25 = sphi %s1599_s25, %s2017_s25   ;;  %s1533_s24 = sphi %s1597_s24, %s2016_s24   ;;  %s1529_s23 = sphi %s1595_s23, %s2015_s23   ;;  %s1525_s22 = sphi %s1593_s22, %s2014_s22   ;;  %s1521_s21 = sphi %s1591_s21, %s2013_s21  }
   0x6   : > { %s28_s7 = sadd.s32 1, %s1541_s26  ;;  %s31_s8 = sadd.s32 1, %s1545_s27 }
   0x7   : > { %p29_p0 = scmp.ge.s32.totalorder %s28_s7, 2  ;;  %p73_p1 = scmp.ne.s32.totalorder %s1529_s23, %s1525_s22 }
   0x8   : > { %p74_p2 = scmp.eq.s32.totalorder %s1549_s28, 0  ;;  %p189_p5 = scmp.eq.s32.totalorder %s1141_s29, 3 }
   0x9   : > { %s2021_s7 = smov (%p29_p0, %s28_s7), 0  ;;  %s2023_s8 = smov (!%p29_p0, %s31_s8), %s1545_s27 }
   0xa   : > { %s62_s9 = ssub.s32 %s1541_s26, %s2021_s7  ;;  %p1643_p3 = por %p74_p2, %p73_p1 }
   0xb   : > { %p33_p4 = scmp.ge.s32.totalorder %s2023_s8, 2  ;;  %p194_p6 = scmp.ne.s32.totalorder %s1525_s22, %s1521_s21 }
   0xc   : > { %p195_p7 = scmp.eq.s32.totalorder %s1142_s30, 3  ;;  %p1651_p8 = por %p189_p5, %p73_p1 }
   0xd   : > { %s2025_s8 = smov (%p33_p4, %s2023_s8), 0  ;;  %s66_s15 = sadd.s32 1, %s1529_s23 }
   0xe   : > { %p1655_p9 = por %p195_p7, %p194_p6  ;;  %s61_s13 = ssub.s32 %s1545_s27, %s2025_s8 }
   0xf   : > { %s63_s14 = sor.u32 %s62_s9, %s61_s13  ;;  %p1144_p11 = scmp.ge.s32.totalorder %s1549_s28, 4 }
  0x10   : > { %p64_p10 = scmp.eq.s32.totalorder %s63_s14, 0 }
  0x11   : > { %223 = sbr.rel (%p1144_p11) target bundleno = 39 (0x27), region = 32 }
  0x12   : > { %s1663_s16 = scalar_select %p64_p10, %s1529_s23, %s66_s15  }
  0x18   : > { %233 = sbr.rel (!%p1643_p3) target bundleno = 39 (0x27), region = 40  ;;  %s235_s17 = sand.u32 (%p1643_p3), 1, %s1529_s23  }
  0x19   : > { %s1146_s18 = sshll.u32 (%p1643_p3), %s1541_s26, 1  ;;  %s1145_s19 = sshll.u32 (%p1643_p3), %s235_s17, 7 }
  0x1a   : > { %s1147_s20 = sshll.u32 (%p1643_p3), %s1545_s27, 5  ;;  %s237_s10 = scalar_lea.vmem (%p1643_p3), [#allocation2], %s1145_s19 }
  0x1b   : > { %s240_s29 = sadd.s32 (%p1643_p3), %s1147_s20, %s1146_s18 }
  0x1c   : > { %s1148_s30 = sshll.u32 (%p1643_p3), %s240_s29, 3 }
  0x1d   : > { %s1674_s14 = scalar_lea.vmem (%p1643_p3), %s2004_s1, %s1148_s30 }
  0x1e   : > { %v300_v0 = vld [vmem:[%s1674_s14] sm:$0xff] (%p1643_p3)  ;;  %v302_v1 = vld [vmem:[%s1674_s14 + $0x8] sm:$0xff] (%p1643_p3) }
  0x1f   : > { %v304_v2 = vld [vmem:[%s1674_s14 + $0x20] sm:$0xff]  ;;  %301 = vst [vmem:[%s237_s10] sm:$0xff] %v300_v0  ;;  %303 = vst [vmem:[%s237_s10 + $0x8] sm:$0xff] %v302_v1  ;;  %v306_v3 = vld [vmem:[%s1674_s14 + $0x28] sm:$0xff] }
  0x20   : > { %305 = vst [vmem:[%s237_s10 + $0x10] sm:$0xff] %v304_v2  ;;  %v308_v4 = vld [vmem:[%s1674_s14 + $0x40] sm:$0xff]  ;;  %v310_v5 = vld [vmem:[%s1674_s14 + $0x48] sm:$0xff]  ;;  %307 = vst [vmem:[%s237_s10 + $0x18] sm:$0xff] %v306_v3 }
  0x21   : > { %309 = vst [vmem:[%s237_s10 + $0x20] sm:$0xff] %v308_v4  ;;  %311 = vst [vmem:[%s237_s10 + $0x28] sm:$0xff] %v310_v5  ;;  %v312_v6 = vld [vmem:[%s1674_s14 + $0x60] sm:$0xff]  ;;  %v314_v7 = vld [vmem:[%s1674_s14 + $0x68] sm:$0xff] }
  0x22   : > { %v316_v8 = vld [vmem:[%s1674_s14 + $0x80] sm:$0xff]  ;;  %313 = vst [vmem:[%s237_s10 + $0x30] sm:$0xff] %v312_v6  ;;  %315 = vst [vmem:[%s237_s10 + $0x38] sm:$0xff] %v314_v7  ;;  %v318_v9 = vld [vmem:[%s1674_s14 + $0x88] sm:$0xff] }
  0x23   : > { %317 = vst [vmem:[%s237_s10 + $0x40] sm:$0xff] %v316_v8  ;;  %v320_v10 = vld [vmem:[%s1674_s14 + $0xa0] sm:$0xff]  ;;  %v322_v11 = vld [vmem:[%s1674_s14 + $0xa8] sm:$0xff]  ;;  %319 = vst [vmem:[%s237_s10 + $0x48] sm:$0xff] %v318_v9 }
  0x24   : > { %321 = vst [vmem:[%s237_s10 + $0x50] sm:$0xff] %v320_v10  ;;  %323 = vst [vmem:[%s237_s10 + $0x58] sm:$0xff] %v322_v11  ;;  %v324_v12 = vld [vmem:[%s1674_s14 + $0xc0] sm:$0xff]  ;;  %v326_v13 = vld [vmem:[%s1674_s14 + $0xc8] sm:$0xff] }
  0x25   : > { %v328_v14 = vld [vmem:[%s1674_s14 + $0xe0] sm:$0xff]  ;;  %325 = vst [vmem:[%s237_s10 + $0x60] sm:$0xff] %v324_v12  ;;  %327 = vst [vmem:[%s237_s10 + $0x68] sm:$0xff] %v326_v13  ;;  %v330_v15 = vld [vmem:[%s1674_s14 + $0xe8] sm:$0xff] }
  0x26   : > { %329 = vst [vmem:[%s237_s10 + $0x70] sm:$0xff] %v328_v14  ;;  %331 = vst [vmem:[%s237_s10 + $0x78] sm:$0xff] %v330_v15 }
  0x27 PF: > { %p1149_p12 = scmp.ge.s32.totalorder %s1549_s28, 1  ;;  %p336_p13 = scmp.lt.s32.totalorder %s1549_s28, 5 }
  0x29   : > { %p337_p0 = pnand %p1149_p12, %p336_p13 }
  0x2a   : > { %v386_v16 = vld [vmem:[%s2005_s2] sm:$0x3] (!%p337_p0)  ;;  %vm395_vm0 = vcmask (!%p337_p0), 1041408   ;;  %p376_p1 = scmp.lt.s32.totalorder (!%p337_p0), %s1537_s25, 1  ;;  %v1551_v17 = vmov (!%p337_p0), 0.0   ;;  %vm1552_vm1 = vmmov (!%p337_p0), 0   ;;  %v387_v57 = vlaneseq (!%p337_p0) }
  0x2b   : > { %340 = sbr.rel (%p337_p0) target bundleno = 968 (0x3c8), region = 78  ;;  %1271 = vmatprep.subr.bf16.mxu0 (!%p337_p0), %v1551_v17  ;;  %v397_v18 = vsel (!%p337_p0), %vm395_vm0, %v386_v16, 0  ;;  %1273 = vmatprep.mubr.msk.bf16.mxu0 (!%p337_p0), %vm1552_vm1, %v1551_v17  ;;  %v1431_v19 = vld [vmem:[%s2007_s4] sm:$0xff] (!%p337_p0)   ;;  %v1432_v21 = vld [vmem:[%s2007_s4 + $0x8] sm:$0xff] (!%p337_p0)   ;;  %s1715_s14 = sand.u32 (!%p337_p0), 1, %s1525_s22   ;;  %vm391_vm2 = vcmask (!%p337_p0), 31744  }
  0x2c   : > { %1272 = vmatpush3.bf16.msra.mxu0 (!%p337_p0), %v397_v18  ;;  %1277 = vmatprep.subr.bf16.mxu1 (!%p337_p0), %v1551_v17  ;;  %v569_v20 = vld [vmem:[%s2006_s3] sm:$0x3] (!%p337_p0)  ;;  %s1150_s15 = sshll.u32 (!%p337_p0), %s1715_s14, 7  ;;  %v1433_v28 = vld [vmem:[%s2007_s4 + $0x10] sm:$0xff] (!%p337_p0)   ;;  %v1434_v33 = vld [vmem:[%s2007_s4 + $0x18] sm:$0xff] (!%p337_p0)   ;;  %v1788_v58 = vshrl.u32 (!%p337_p0), %v387_v57, 7 }
  0x2d   : > { %1355 = vmatprep.subr.msk.bf16.mxu0 (!%p337_p0), %vm395_vm0, %v569_v20  ;;  %1293 = vmatprep.mubr.msk.bf16.mxu1 (!%p337_p0), %vm1552_vm1, %v1551_v17  ;;  %s1724_s29 = scalar_lea.vmem (!%p337_p0), [#allocation2], %s1150_s15  ;;  %v595_v26 = vsel (!%p337_p0), %vm395_vm0, %v569_v20, 0  ;;  %v1435_v36 = vld [vmem:[%s2007_s4 + $0x20] sm:$0xff] (!%p337_p0)   ;;  %v1436_v41 = vld [vmem:[%s2007_s4 + $0x28] sm:$0xff] (!%p337_p0)   ;;  %v1437_v47 = vld [vmem:[%s2007_s4 + $0x30] sm:$0xff] (!%p337_p0)   ;;  %s1151_s17 = sshll.u32 (!%p337_p0), %s1715_s14, 3 }
  0x2e   : > { %1278 = vmatpush3.bf16.msra.mxu1 (!%p337_p0), %v1431_v19  ;;  %v545_v23 = vld [vmem:[%s1724_s29] sm:$0xff] (!%p337_p0)  ;;  %v546_v24 = vld [vmem:[%s1724_s29 + $0x8] sm:$0xff] (!%p337_p0)  ;;  %v547_v29 = vld [vmem:[%s1724_s29 + $0x10] sm:$0xff] (!%p337_p0)  ;;  %v389_v59 = vsub.s32 (!%p337_p0), 0, %v1788_v58  ;;  %s1221_s19 = sshll.u32 (!%p337_p0), %s1533_s24, 1  ;;  %s375_s30 = scalar_lea.vmem (!%p337_p0), [#allocation3], %s1151_s17 }
  0x2f   : > { %1279 = vmatprep.subr.bf16.mxu1 (!%p337_p0), %v1551_v17  ;;  %v561_v27 = vpack.c.bf16 (!%p337_p0), %v546_v24, %v545_v23  ;;  %v548_v30 = vld [vmem:[%s1724_s29 + $0x18] sm:$0xff] (!%p337_p0)  ;;  %v549_v31 = vld [vmem:[%s1724_s29 + $0x20] sm:$0xff] (!%p337_p0)  ;;  %v550_v32 = vld [vmem:[%s1724_s29 + $0x28] sm:$0xff] (!%p337_p0)  ;;  %s1044_s9 = sshll.u32 (!%p337_p0), %s375_s30, 4  ;;  %s1029_s15 = scalar_lea.sflag (!%p337_p0), [#allocation4], %s1715_s14  ;;  %s1944_s9 = int_to_ptr.vmem [resolvable:$true] %s1044_s9 }
  0x30   : > { %v562_v34 = vpack.c.bf16 (!%p337_p0), %v548_v30, %v547_v29  ;;  %v563_v35 = vpack.c.bf16 (!%p337_p0), %v550_v32, %v549_v31  ;;  %v551_v37 = vld [vmem:[%s1724_s29 + $0x30] sm:$0xff] (!%p337_p0)  ;;  %v552_v38 = vld [vmem:[%s1724_s29 + $0x38] sm:$0xff] (!%p337_p0)  ;;  %v553_v39 = vld [vmem:[%s1724_s29 + $0x40] sm:$0xff] (!%p337_p0)  ;;  %s1553_s17 = smov (!%p337_p0), [#allocation3]  }
  0x31   : > { %v554_v40 = vld [vmem:[%s1724_s29 + $0x48] sm:$0xff] (!%p337_p0)  ;;  %v564_v42 = vpack.c.bf16 (!%p337_p0), %v552_v38, %v551_v37  ;;  %v555_v44 = vld [vmem:[%s1724_s29 + $0x50] sm:$0xff] (!%p337_p0)  ;;  %v556_v45 = vld [vmem:[%s1724_s29 + $0x58] sm:$0xff] (!%p337_p0)  ;;  %v748_v37 = vsub.s32 (!%p337_p0), 4, %v1788_v58  ;;  %v760_v38 = vsub.s32 (!%p337_p0), 5, %v1788_v58 }
  0x32   : > { %s377_s18 = scalar_select %p376_p1, %s1537_s25, 1  ;;  %1280 = vmatpush3.bf16.msra.mxu1 %v1432_v21  ;;  %v565_v43 = vpack.c.bf16 %v554_v40, %v553_v39  ;;  %v566_v46 = vpack.c.bf16 %v556_v45, %v555_v44  ;;  %v1438_v48 = vld [vmem:[%s2007_s4 + $0x38] sm:$0xff]   ;;  %v557_v49 = vld [vmem:[%s1724_s29 + $0x60] sm:$0xff]  ;;  %v559_v52 = vld [vmem:[%s1724_s29 + $0x70] sm:$0xff]  ;;  %v772_v39 = vsub.s32 6, %v1788_v58  ;;  %v784_v40 = vsub.s32 7, %v1788_v58 }
  0x33   : > { %1281 = vmatprep.subr.bf16.mxu1 %v1551_v17  ;;  %v558_v50 = vld [vmem:[%s1724_s29 + $0x68] sm:$0xff]  ;;  %v560_v53 = vld [vmem:[%s1724_s29 + $0x78] sm:$0xff]  ;;  %v1439_v55 = vld [vmem:[%s2007_s4 + $0x40] sm:$0xff]   ;;  %s1455_s29 = scalar_lea.vmem %s1944_s9, 128 }
  0x34   : > { %s1152_s10 = sshll.u32 %s377_s18, 3  ;;  %v567_v51 = vpack.c.bf16 %v558_v50, %v557_v49  ;;  %v568_v54 = vpack.c.bf16 %v560_v53, %v559_v52  ;;  %v1440_v56 = vld [vmem:[%s2007_s4 + $0x48] sm:$0xff]   ;;  %v1794_v60 = vld [vmem:[%s2008_s5] sm:$0xff]  ;;  %v1441_v21 = vld [vmem:[%s2007_s4 + $0x50] sm:$0xff]   ;;  %p1456_p2 = scmp.ne.s32.totalorder %s1944_s9, %s1455_s29 }
  0x35   : > { %s379_s20 = scalar_lea.vmem %s2003_s0, %s1152_s10  ;;  %v390_v61 = vrot.slane %v1794_v60, %v389_v59  ;;  %v1442_v23 = vld [vmem:[%s2007_s4 + $0x58] sm:$0xff]   ;;  %v1443_v24 = vld [vmem:[%s2007_s4 + $0x60] sm:$0xff]   ;;  %v1448_v29 = vld [vmem:[%s2007_s4 + $0x88] sm:$0xff]  }
  0x36   : > { %v384_v22 = vld [vmem:[%s379_s20] sm:$0xff]  ;;  %1282 = vmatpush3.bf16.msra.mxu1 %v1433_v28  ;;  %v1449_v30 = vld [vmem:[%s2007_s4 + $0x90] sm:$0xff]   ;;  %v1450_v31 = vld [vmem:[%s2007_s4 + $0x98] sm:$0xff]   ;;  %s1222_s20 = sshll.u32 %s1537_s25, 2  ;;  %p1457_p3 = pnand %p1456_p2, %p1651_p8 }
  0x37   : > { %v385_v25 = vpack.c.bf16 %v384_v22, %v384_v22  ;;  %1283 = vmatprep.subr.bf16.mxu1 %v1551_v17  ;;  %v1447_v28 = vld [vmem:[%s2007_s4 + $0x80] sm:$0xff]   ;;  %s1041_s18 = sadd.s32 %s1222_s20, %s1221_s19  ;;  %s1459_s19 = sshll.u32 %s1553_s17, 4  ;;  %s1460_s19 = int_to_ptr.vmem [resolvable:$false] %s1459_s19 }
  0x38   : > { %v1451_v32 = vld [vmem:[%s2007_s4 + $0xa0] sm:$0xff]   ;;  %s1223_s13 = sshll.u32 %s1041_s18, 6  ;;  %p1458_p4 = pneg %p1457_p3 }
  0x39   : > { %1274 = vmatmul.mubr.msk.bf16.vlgmr.msra.gmra.mrb[0].mxu0 %vm391_vm2, %v385_v25  ;;  %v1444_v25 = vld [vmem:[%s2007_s4 + $0x68] sm:$0xff]   ;;  %s1949_s10 = scalar_lea.hbm %s2009_s6, %s1223_s13  ;;  %s1461_s20 = scalar_lea.vmem %s1460_s19, 256 }
  0x3a   : > { %1298 = vmatpush3.bf16.msra.mxu0 %v595_v26  ;;  %1299 = vmatprep.mubr.msk.bf16.mxu0 %vm391_vm2, %v561_v27  ;;  %v1445_v26 = vld [vmem:[%s2007_s4 + $0x70] sm:$0xff]   ;;  %v1446_v27 = vld [vmem:[%s2007_s4 + $0x78] sm:$0xff]   ;;  %p1462_p5 = scmp.lt.s32.totalorder %s1944_s9, %s1460_s19  ;;  %p1463_p6 = scmp.lt.s32.totalorder %s1461_s20, %s1455_s29 }
  0x3b   : > { %1315 = vmatprep.subr.bf16.mxu0 %v1551_v17  ;;  %1284 = vmatpush3.bf16.msra.mxu1 %v1434_v33  ;;  %v1452_v33 = vld [vmem:[%s2007_s4 + $0xa8] sm:$0xff]  }
  0x3c   : > { %1285 = vmatprep.subr.bf16.mxu1 %v1551_v17  ;;  %p1464_p7 = por %p1463_p6, %p1462_p5 }
  0x3e   : > { %p1465_p10 = pnand %p1464_p7, %p1458_p4 }
  0x3f   : > { %1286 = vmatpush3.bf16.msra.mxu1 %v1435_v36  ;;  %v736_v36 = vsub.s32 3, %v1788_v58 }
  0x40   : > { %1287 = vmatprep.subr.bf16.mxu1 %v1551_v17 }
  0x41   : > { %1300 = vmatmul.mubr.msk.bf16.vlgmr.msra.gmra.mrb[4].mxu0 %vm391_vm2, %v562_v34  ;;  %v702_v34 = vsub.s32 1, %v1788_v58 }
  0x42   : > { %1303 = vmatprep.mubr.msk.bf16.mxu0 %vm391_vm2, %v563_v35  ;;  %1316 = vmatpush3.bf16.msra.mxu0 %v1439_v55  ;;  %v724_v35 = vsub.s32 2, %v1788_v58 }
  0x43   : > { %1288 = vmatpush3.bf16.msra.mxu1 %v1436_v41  ;;  %1317 = vmatprep.subr.bf16.mxu0 %v1551_v17  ;;  %v1888_v41 = vrot.slane %v1794_v60, %v702_v34 }
  0x44   : > { %1289 = vmatprep.subr.bf16.mxu1 %v1551_v17 }
  0x46   : > { %1318 = vmatpush3.bf16.msra.mxu0 %v1440_v56 }
  0x47   : > { %1290 = vmatpush3.bf16.msra.mxu1 %v1437_v47  ;;  %1319 = vmatprep.subr.bf16.mxu0 %v1551_v17 }
  0x48   : > { %1291 = vmatprep.subr.bf16.mxu1 %v1551_v17 }
  0x49   : > { %1304 = vmatmul.mubr.msk.bf16.gmra.mrb[8].mxu0 %vm391_vm2, %v564_v42 }
  0x4a   : > { %1307 = vmatprep.mubr.msk.bf16.mxu0 %vm391_vm2, %v565_v43  ;;  %1320 = vmatpush3.bf16.msra.mxu0 %v1441_v21 }
  0x4b   : > { %1292 = vmatpush3.bf16.msra.mxu1 %v1438_v48  ;;  %1321 = vmatprep.subr.bf16.mxu0 %v1551_v17 }
  0x4c   : > { %1335 = vmatprep.subr.bf16.mxu1 %v1551_v17 }
  0x4e   : > { %1322 = vmatpush3.bf16.msra.mxu0 %v1442_v23 }
  0x4f   : > { %1323 = vmatprep.subr.bf16.mxu0 %v1551_v17 }
  0x51   : > { %1308 = vmatmul.mubr.msk.bf16.gmra.mrb[12].mxu0 %vm391_vm2, %v566_v46 }
  0x52   : > { %1311 = vmatprep.mubr.msk.bf16.mxu0 %vm391_vm2, %v567_v51  ;;  %1324 = vmatpush3.bf16.msra.mxu0 %v1443_v24 }
  0x53   : > { %1325 = vmatprep.subr.bf16.mxu0 %v1551_v17 }
  0x56   : > { %1326 = vmatpush3.bf16.msra.mxu0 %v1444_v25 }
  0x57   : > { %1327 = vmatprep.subr.bf16.mxu0 %v1551_v17 }
  0x59   : > { %1312 = vmatmul.mubr.msk.bf16.gmra.mrb[16].mxu0 %vm391_vm2, %v568_v54 }
  0x5a   : > { %1331 = vmatprep.mubr.msk.bf16.mxu0 %vm1552_vm1, %v1551_v17  ;;  %1328 = vmatpush3.bf16.msra.mxu0 %v1445_v26 }
  0x5b   : > { %1329 = vmatprep.subr.bf16.mxu0 %v1551_v17 }
  0x5e   : > { %1330 = vmatpush3.bf16.msra.mxu0 %v1446_v27 }
 0x10c   : > { %v433_v62 = vpop.f32.mrb[0].mxu0 }
 0x10d   : > { %v434_v63 = vadd.f32 %v433_v62, %v390_v61  ;;  %v1275_v0 = vpop.f32.mrb[1].mxu0 }
 0x10e   : > { %v436_v1 = vpop.f32.mrb[2].mxu0 }
 0x10f   : > { %v439_v2 = vmax.f32 %v434_v63, 0.0  ;;  %v1276_v3 = vpop.f32.mrb[3].mxu0 }
 0x111   : > { %v440_v4 = vpack.c.bf16 %v439_v2, %v439_v2 }
 0x113   : > { %1294 = vmatmul.mubr.bf16.vlgmr.msra.gmra.mrb[0].mxu1 %v440_v4 }
 0x114   : > { %v1799_v5 = vpop.f32.mrb[4].mxu0  ;;  %1351 = vmatprep.mubr.msk.bf16.mxu1 %vm1552_vm1, %v1551_v17  ;;  %1336 = vmatpush3.bf16.msra.mxu1 %v1447_v28 }
 0x115   : > { %v1803_v6 = vpop.f32.mrb[5].mxu0  ;;  %1337 = vmatprep.subr.bf16.mxu1 %v1551_v17 }
 0x116   : > { %v1805_v7 = vpop.f32.mrb[6].mxu0 }
 0x117   : > { %v1807_v8 = vpop.f32.mrb[7].mxu0 }
 0x118   : > { %1338 = vmatpush3.bf16.msra.mxu1 %v1448_v29 }
 0x119   : > { %1339 = vmatprep.subr.bf16.mxu1 %v1551_v17 }
 0x11c   : > { %v1809_v9 = vpop.f32.mrb[8].mxu0  ;;  %1340 = vmatpush3.bf16.msra.mxu1 %v1449_v30 }
 0x11d   : > { %v1811_v10 = vpop.f32.mrb[9].mxu0  ;;  %1341 = vmatprep.subr.bf16.mxu1 %v1551_v17 }
 0x11e   : > { %v1813_v11 = vpop.f32.mrb[10].mxu0 }
 0x11f   : > { %v1815_v12 = vpop.f32.mrb[11].mxu0 }
 0x120   : > { %1342 = vmatpush3.bf16.msra.mxu1 %v1450_v31 }
 0x121   : > { %1343 = vmatprep.subr.bf16.mxu1 %v1551_v17 }
 0x124   : > { %v1817_v13 = vpop.f32.mrb[12].mxu0  ;;  %1344 = vmatpush3.bf16.msra.mxu1 %v1451_v32 }
 0x125   : > { %v1819_v14 = vpop.f32.mrb[13].mxu0  ;;  %1345 = vmatprep.subr.bf16.mxu1 %v1551_v17 }
 0x126   : > { %v1821_v15 = vpop.f32.mrb[14].mxu0 }
 0x127   : > { %v1823_v16 = vpop.f32.mrb[15].mxu0 }
 0x128   : > { %1346 = vmatpush3.bf16.msra.mxu1 %v1452_v33 }
 0x129   : > { %1347 = vmatprep.subr.bf16.mxu1 %v1551_v17 }
 0x12c   : > { %v1825_v18 = vpop.f32.mrb[16].mxu0 }
 0x12d   : > { %v1827_v19 = vpop.f32.mrb[17].mxu0 }
 0x12e   : > { %v1829_v20 = vpop.f32.mrb[18].mxu0 }
 0x12f   : > { %v1834_v22 = vpop.f32.mrb[19].mxu0 }
 0x1e6   : > { %v539_v42 = vpop.f32.mrb[0].mxu1 }
 0x1e7   : > { %v697_v43 = vrot.slane %v539_v42, %v389_v59  ;;  %v713_v44 = vrot.slane %v539_v42, %v702_v34  ;;  %v725_v45 = vrot.slane %v539_v42, %v724_v35  ;;  %v737_v46 = vrot.slane %v539_v42, %v736_v36  ;;  %v1295_v47 = vpop.f32.mrb[1].mxu1 }
 0x1e8   : > { %v749_v48 = vrot.slane %v539_v42, %v748_v37  ;;  %v761_v49 = vrot.slane %v539_v42, %v760_v38  ;;  %v773_v50 = vrot.slane %v539_v42, %v772_v39  ;;  %v785_v51 = vrot.slane %v539_v42, %v784_v40  ;;  %v542_v52 = vpop.f32.mrb[2].mxu1 }
 0x1e9   : > { %v698_v53 = vadd.f32 %v697_v43, %v1803_v6  ;;  %v714_v54 = vadd.f32 %v1799_v5, %v713_v44  ;;  %v726_v55 = vadd.f32 %v725_v45, %v1811_v10  ;;  %v738_v56 = vadd.f32 %v1809_v9, %v737_v46  ;;  %v1296_v57 = vpop.f32.mrb[3].mxu1 }
 0x1ea   : > { %v750_v59 = vadd.f32 %v749_v48, %v1819_v14  ;;  %v762_v61 = vadd.f32 %v1817_v13, %v761_v49  ;;  %v774_v62 = vadd.f32 %v773_v50, %v1827_v19  ;;  %v786_v63 = vadd.f32 %v1825_v18, %v785_v51 }
 0x1eb   : > { %v704_v0 = vadd.f32 %v1888_v41, %v698_v53  ;;  %v716_v1 = vadd.f32 %v714_v54, %v1888_v41  ;;  %v728_v2 = vadd.f32 %v726_v55, %v1888_v41  ;;  %v787_v3 = vadd.f32 %v1829_v20, %v785_v51 }
 0x1ec   : > { %v740_v6 = vadd.f32 %v738_v56, %v1888_v41  ;;  %v752_v9 = vadd.f32 %v750_v59, %v1888_v41  ;;  %v764_v10 = vadd.f32 %v762_v61, %v1888_v41  ;;  %v699_v18 = vadd.f32 %v697_v43, %v1807_v8  ;;  %v1453_v61 = vld [vmem:[%s2007_s4 + $0xb0] sm:$0xff]  }
 0x1ed   : > { %v706_v4 = vmax.f32 %v704_v0, 0.0  ;;  %v718_v5 = vmax.f32 %v716_v1, 0.0  ;;  %v730_v14 = vmax.f32 %v728_v2, 0.0  ;;  %v715_v19 = vadd.f32 %v1805_v7, %v713_v44  ;;  %1348 = vmatpush3.bf16.msra.mxu1 %v1453_v61 }
 0x1ee   : > { %v776_v21 = vadd.f32 %v774_v62, %v1888_v41  ;;  %v727_v23 = vadd.f32 %v725_v45, %v1815_v12  ;;  %v739_v20 = vadd.f32 %v1813_v11, %v737_v46  ;;  %v751_v24 = vadd.f32 %v749_v48, %v1823_v16  ;;  %1349 = vmatprep.subr.bf16.mxu1 %v1551_v17 }
 0x1ef   : > { %v720_v13 = vadd.f32 %v718_v5, %v706_v4  ;;  %v742_v26 = vmax.f32 %v740_v6, 0.0  ;;  %v705_v27 = vadd.f32 %v1888_v41, %v699_v18  ;;  %v717_v28 = vadd.f32 %v715_v19, %v1888_v41 }
 0x1f0   : > { %v754_v29 = vmax.f32 %v752_v9, 0.0  ;;  %v729_v30 = vadd.f32 %v727_v23, %v1888_v41  ;;  %v741_v8 = vadd.f32 %v739_v20, %v1888_v41  ;;  %v763_v7 = vadd.f32 %v1821_v15, %v761_v49 }
 0x1f1   : > { %v732_v25 = vadd.f32 %v730_v14, %v720_v13  ;;  %v707_v32 = vmax.f32 %v705_v27, 0.0  ;;  %v719_v12 = vmax.f32 %v717_v28, 0.0  ;;  %v775_v11 = vadd.f32 %v773_v50, %v1834_v22 }
 0x1f2   : > { %v766_v33 = vmax.f32 %v764_v10, 0.0  ;;  %v788_v16 = vadd.f32 %v786_v63, %v1888_v41  ;;  %v731_v38 = vmax.f32 %v729_v30, 0.0  ;;  %v753_v39 = vadd.f32 %v751_v24, %v1888_v41 }
 0x1f3   : > { %v744_v31 = vadd.f32 %v742_v26, %v732_v25  ;;  %v721_v37 = vadd.f32 %v719_v12, %v707_v32  ;;  %v778_v40 = vmax.f32 %v776_v21, 0.0  ;;  %v743_v44 = vmax.f32 %v741_v8, 0.0 }
 0x1f4   : > { %v765_v45 = vadd.f32 %v763_v7, %v1888_v41  ;;  %v790_v15 = vmax.f32 %v788_v16, 0.0  ;;  %v755_v48 = vmax.f32 %v753_v39, 0.0  ;;  %v777_v22 = vadd.f32 %v775_v11, %v1888_v41 }
 0x1f5   : > { %v756_v34 = vadd.f32 %v754_v29, %v744_v31  ;;  %v733_v43 = vadd.f32 %v731_v38, %v721_v37  ;;  %v789_v49 = vadd.f32 %v787_v3, %v1888_v41  ;;  %v1454_v41 = vld [vmem:[%s2007_s4 + $0xb8] sm:$0xff]   ;;  %v815_v62 = vrot.slane %v1794_v60, %v724_v35 }
 0x1f6   : > { %v767_v52 = vmax.f32 %v765_v45, 0.0  ;;  %v779_v54 = vmax.f32 %v777_v22, 0.0  ;;  %1350 = vmatpush3.bf16.msra.mxu1 %v1454_v41  ;;  %v928_v17 = vrot.slane %v1794_v60, %v736_v36 }
 0x1f7   : > { %v768_v42 = vadd.f32 %v766_v33, %v756_v34  ;;  %v745_v47 = vadd.f32 %v743_v44, %v733_v43  ;;  %v791_v55 = vmax.f32 %v789_v49, 0.0 }
 0x1f9   : > { %v780_v46 = vadd.f32 %v778_v40, %v768_v42  ;;  %v757_v51 = vadd.f32 %v755_v48, %v745_v47 }
 0x1fb   : > { %v792_v50 = vadd.f32 %v790_v15, %v780_v46  ;;  %v769_v53 = vadd.f32 %v767_v52, %v757_v51 }
 0x1fd   : > { %v781_v56 = vadd.f32 %v779_v54, %v769_v53 }
 0x1ff   : > { %v793_v57 = vadd.f32 %v791_v55, %v781_v56 }
 0x201   : > { %v794_v59 = vpack.c.bf16 %v793_v57, %v792_v50 }
 0x203   : > { %1332 = vmatmul.mubr.bf16.vlgmr.msra.gmra.mrb[20].mxu0 %v794_v59 }
 0x2d6   : > { %v898_v63 = vpop.f32.mrb[20].mxu0 }
 0x2d7   : > { %v899_v0 = vadd.f32 %v898_v63, %v815_v62  ;;  %v1333_v1 = vpop.f32.mrb[21].mxu0 }
 0x2d8   : > { %v901_v2 = vpop.f32.mrb[22].mxu0 }
 0x2d9   : > { %v902_v3 = vadd.f32 %v901_v2, %v815_v62  ;;  %v1334_v4 = vpop.f32.mrb[23].mxu0  ;;  %v905_v5 = vmax.f32 %v899_v0, 0.0 }
 0x2db   : > { %v906_v6 = vmax.f32 %v902_v3, 0.0 }
 0x2dd   : > { %v907_v9 = vpack.c.bf16 %v906_v6, %v905_v5 }
 0x2df   : > { %1352 = vmatmul.mubr.bf16.vlgmr.msra.gmra.mrb[4].mxu1 %v907_v9 }
 0x3b2   : > { %v1011_v35 = vpop.f32.mrb[4].mxu1 }
 0x3b3   : > { %v1353_v10 = vpop.f32.mrb[5].mxu1  ;;  %v1012_v14 = vadd.f32 %v1011_v35, %v928_v17 }
 0x3b4   : > { %v1014_v13 = vpop.f32.mrb[6].mxu1 }
 0x3b5   : > { %v1015_v18 = vadd.f32 %v1014_v13, %v928_v17  ;;  %v1354_v19 = vpop.f32.mrb[7].mxu1 }
 0x3b7   : > { %v1231_v58 = vpack.c.bf16 %v1015_v18, %v1012_v14 }
 0x3b9   : > { %1232 = vst [vmem:[%s375_s30] sm:$0xff] %v1231_v58  }
 0x3ba   : > { %1468 = shalt.err (!%p1465_p10)
}
 0x3bb   : > { %s1469_s18 = scalar_lea.hbm %s1949_s10, 128  ;;  %s1473_s24 = scalar_lea.hbm %s2009_s6, 512 }
 0x3bc   : > { %p1470_p11 = scmp.ne.s32.totalorder %s1949_s10, %s1469_s18  ;;  %p1474_p0 = scmp.lt.u32.totalorder %s1949_s10, %s2009_s6 }
 0x3bd   : > { %p1475_p1 = scmp.lt.u32.totalorder %s1473_s24, %s1469_s18  ;;  %p1477_p3 = scmp.lt.u32.totalorder %s1469_s18, %s1949_s10 }
 0x3be   : > { %p1471_p12 = pnand %p1470_p11, %p1651_p8 }
 0x3bf   : > { %p1476_p2 = por %p1475_p1, %p1474_p0 }
 0x3c0   : > { %p1472_p13 = pneg %p1471_p12 }
 0x3c1   : > { %p1478_p4 = por %p1477_p3, %p1476_p2 }
 0x3c3   : > { %p1479_p5 = pnand %p1478_p4, %p1472_p13 }
 0x3c5   : > { %1482 = shalt.err (!%p1479_p5)
}
 0x3c6   : > { %s1554_s29 = smov 64   ;;  %s1555_s19 = smov 4  }
 0x3c7   : > { %1356 = dma.vmem_to_hbm [thread:$0]  (%p1651_p8), %s1944_s9, 128, %s1949_s10, %s1029_s15, %s1554_s29, %s1554_s29, %s1555_s19  }
 0x3c8 PF: > { %p1362_p6 = scmp.ge.s32.totalorder %s1549_s28, 2  ;;  %s1059_s20 = sand.u32 1, %s1521_s21  }
 0x3c9   : > { %s1060_s18 = scalar_lea.sflag [#allocation4], %s1059_s20 }
 0x3ca   : > { %p1359_p7 = pnand %p1362_p6, %p1655_p9 }
 0x3cc   : > { %1516 = dma.done.wait (!%p1359_p7), %s1060_s18, 128  }
 0x3cd   : > { %1518 = vsyncadd (!%p1359_p7), %s1060_s18, 4294967168  ;;  %s19_s28 = sadd.s32 1, %s1549_s28   ;;  %s2013_s21 = smov %s1525_s22 }
 0x3ce   : > { %p16_p10 = scmp.ge.s32.totalorder %s19_s28, 6   ;;  %s2014_s22 = smov %s1529_s23 }
 0x3cf   : > { %s2015_s23 = smov %s1663_s16  ;;  %s2016_s24 = smov %s1541_s26 }
 0x3d0   : > { %s2017_s25 = smov %s1545_s27  ;;  %s2018_s26 = smov %s2021_s7 }
 0x3d1   : > { %s2019_s27 = smov %s2025_s8  ;;  %18 = sbr.rel (!%p16_p10) target bundleno = 5 (0x5), region = 127 }
 0x3d8   :  { %1065 = vsyncpa [#allocation4], 1 }
 0x3d9   :  { %1067 = vsyncpa [#allocation4 + $0x1], 1 }

</bundles_post_ra>
